<compile_context>
chip_gen: v7x
topology: tpu7x:2x2x1
jax: 0.10.0
libtpu: 0.0.40
codegen_flags: <defaults>
</compile_context>

<pallas_src>
import functools
import math

import jax
import jax.numpy as jnp
from jax.experimental import pallas as pl
from jax.experimental.pallas import tpu as pltpu


def _round_up(x, m):
  return ((x + m - 1) // m) * m


def _chip_defaults():
  """Per-generation tiling / VMEM budget (conservative for v7x / unknown parts)."""
  try:
    kind = jax.devices()[0].device_kind.lower()
  except Exception:
    kind = ""
  big_vmem = ("v5" in kind) or ("v6" in kind)          # 128 MiB VMEM parts
  vmem_limit = (96 if big_vmem else 48) * 1024 * 1024  # keep <=48 MiB on v7x (64 MiB VMEM)
  return big_vmem, vmem_limit


# ---------------------------------------------------------------------------
# Kernel 1: fused node projections
#   z = x @ [Wq/sqrt(C) | Wk | Wv | Wskip | Wq/sqrt(C)@WeFold] + biases
# emitted directly in the layouts the attention kernel consumes.
# ---------------------------------------------------------------------------
def _fused_proj_kernel(x_ref, w_ref, b_ref, q_ref, kT_ref, v_ref, wf_ref,
                       skip_ref, *, Dh, HFe):
  z = jnp.dot(x_ref[...], w_ref[...],
              preferred_element_type=jnp.float32) + b_ref[...]
  q_ref[...] = z[:, 0 * Dh:1 * Dh].astype(jnp.bfloat16)        # pre-scaled q
  kT_ref[...] = z[:, 1 * Dh:2 * Dh].T.astype(jnp.bfloat16)     # K^T (once/layer)
  v_ref[...] = z[:, 2 * Dh:3 * Dh].astype(jnp.bfloat16)
  skip_ref[...] = z[:, 3 * Dh:4 * Dh]                          # f32 skip
  wf_ref[...] = z[:, 4 * Dh:4 * Dh + HFe].astype(jnp.bfloat16)  # q folded thru We


def fused_projection(x_bf16, w_cat_bf16, b_cat, *, Dh, HFe):
  n, fin = x_bf16.shape
  dtot = w_cat_bf16.shape[1]
  bn = 128                              # n is always padded to a multiple of 128
  return pl.pallas_call(
      functools.partial(_fused_proj_kernel, Dh=Dh, HFe=HFe),
      out_shape=(
          jax.ShapeDtypeStruct((n, Dh), jnp.bfloat16),     # q
          jax.ShapeDtypeStruct((Dh, n), jnp.bfloat16),     # K^T
          jax.ShapeDtypeStruct((n, Dh), jnp.bfloat16),     # v
          jax.ShapeDtypeStruct((n, HFe), jnp.bfloat16),    # folded edge-query
          jax.ShapeDtypeStruct((n, Dh), jnp.float32),      # skip
      ),
      grid=(n // bn,),
      in_specs=[pl.BlockSpec((bn, fin), lambda i: (i, 0)),
                pl.BlockSpec((fin, dtot), lambda i: (0, 0)),
                pl.BlockSpec((1, dtot), lambda i: (0, 0))],
      out_specs=(pl.BlockSpec((bn, Dh), lambda i: (i, 0)),
                 pl.BlockSpec((Dh, bn), lambda i: (0, i)),
                 pl.BlockSpec((bn, Dh), lambda i: (i, 0)),
                 pl.BlockSpec((bn, HFe), lambda i: (i, 0)),
                 pl.BlockSpec((bn, Dh), lambda i: (i, 0))),
      compiler_params=pltpu.CompilerParams(
          dimension_semantics=("parallel",)),
  )(x_bf16, w_cat_bf16, b_cat)


# ---------------------------------------------------------------------------
# Kernel 2: tiled TransformerConv attention (flash-style online softmax)
# ---------------------------------------------------------------------------
def _graph_attn_kernel(q_ref, kT_ref, v_ref, wf_ref, skip_ref, e_ref, mask_ref,
                       wfold2_ref, bn_scale_ref, bn_shift_ref, out_ref,
                       m_sc, l_sc, acc_sc,
                       *, H, C, Fe, Dh, out_pad, apply_bn_relu):
  si = pl.program_id(1)
  n_s = pl.num_programs(1)

  @pl.when(si == 0)
  def _init():
    m_sc[...] = jnp.full(m_sc.shape, -1e30, jnp.float32)
    l_sc[...] = jnp.zeros_like(l_sc)
    acc_sc[...] = jnp.zeros_like(acc_sc)

  q = q_ref[...]                        # [bt, Dh]   bf16 (already / sqrt(C))
  kT = kT_ref[...]                      # [Dh, bs]   bf16
  v = v_ref[...]                        # [bs, Dh]   bf16
  wf = wf_ref[...]                      # [bt, H*Fe] bf16
  e = e_ref[...]                        # [bt, Fe, bs] bf16
  mask = mask_ref[...]                  # [bt, bs]   bf16
  bt, bs = mask.shape

  # Tiny block-diagonal head selectors (built from 2-D iota).
  sel_dh = (jax.lax.broadcasted_iota(jnp.int32, (Dh, H), 0) // C
            == jax.lax.broadcasted_iota(jnp.int32, (Dh, H), 1)
            ).astype(jnp.bfloat16)                               # [Dh, H]
  sel_hd = (jax.lax.broadcasted_iota(jnp.int32, (H, Dh), 0)
            == jax.lax.broadcasted_iota(jnp.int32, (H, Dh), 1) // C
            ).astype(jnp.bfloat16)                               # [H, Dh]

  # ---- scores -------------------------------------------------------------
  # node-key part: ONE 2-D MXU matmul against block-diagonal K
  #   k_bd[h*C+c, h'*bs+s] = kT[h*C+c, s] * [h == h']
  k_bd = (kT[:, None, :] * sel_dh[:, :, None]).reshape(Dh, H * bs)
  qk = jnp.dot(q, k_bd, preferred_element_type=jnp.float32).reshape(bt, H, bs)
  # edge part: batched MXU contraction over Fe (no per-feature Python loop)
  qe = jnp.einsum('thf,tfs->ths', wf.reshape(bt, H, Fe), e,
                  preferred_element_type=jnp.float32)            # [bt, H, bs]

  valid = (mask > 0)[:, None, :]                                 # [bt, 1, bs]
  scores = jnp.where(valid, qk + qe, jnp.float32(-1e30))

  # ---- online softmax over the source axis --------------------------------
  m_prev = m_sc[...]
  m_new = jnp.maximum(m_prev, jnp.max(scores, axis=-1, keepdims=True))
  corr = jnp.exp(m_prev - m_new)
  p = jnp.where(valid, jnp.exp(scores - m_new), 0.0)             # [bt, H, bs]
  l_sc[...] = corr * l_sc[...] + jnp.sum(p, axis=-1, keepdims=True)

  p16 = p.astype(jnp.bfloat16)
  # value part: ONE 2-D MXU matmul against block-diagonal V
  v_bd = (v[None, :, :] * sel_hd[:, None, :]).reshape(H * bs, Dh)
  pv = jnp.dot(p16.reshape(bt, H * bs), v_bd,
               preferred_element_type=jnp.float32)               # [bt, Dh]
  # edge-value part: batched contraction over sources, folded through We
  coef = jnp.einsum('ths,tfs->thf', p16, e,
                    preferred_element_type=jnp.float32)          # [bt, H, Fe]
  pv = pv + jnp.dot(coef.reshape(bt, H * Fe).astype(jnp.bfloat16),
                    wfold2_ref[...], preferred_element_type=jnp.float32)

  acc_sc[...] = corr * acc_sc[...] + pv.reshape(bt, H, C)
  m_sc[...] = m_new

  # ---- finalize ------------------------------------------------------------
  @pl.when(si == n_s - 1)
  def _finalize():
    l = l_sc[...]
    inv_l = jnp.where(
        l > 0, pl.reciprocal(jnp.maximum(l, 1e-30), approx=True), 0.0)  # EUP
    y = (acc_sc[...] * inv_l).reshape(acc_sc.shape[0], Dh) + skip_ref[...]
    if apply_bn_relu:
      # eval-mode BatchNorm1d folded into an affine transform, then ReLU
      y = jnp.maximum(y * bn_scale_ref[...] + bn_shift_ref[...], 0.0)
    if out_pad > Dh:
      # keep the stored output lane-dense (multiple of 128 lanes)
      y = jnp.concatenate(
          [y, jnp.zeros((y.shape[0], out_pad - Dh), jnp.float32)], axis=-1)
    out_ref[...] = y
  # TODO(synk): training-mode dropout / BN batch statistics not implemented.


def transformer_conv_attention(q, kT, v, wf, skip, e_tfs, mask, wfold2,
                               bn_scale, bn_shift, *, H, C, apply_bn_relu,
                               bt, bs, vmem_limit):
  n = q.shape[0]
  Dh = H * C
  Fe = e_tfs.shape[1]
  HFe = H * Fe
  out_pad = _round_up(max(Dh, 128), 128)
  grid = (n // bt, n // bs)

  kernel = functools.partial(_graph_attn_kernel, H=H, C=C, Fe=Fe, Dh=Dh,
                             out_pad=out_pad, apply_bn_relu=apply_bn_relu)
  out = pl.pallas_call(
      kernel,
      out_shape=jax.ShapeDtypeStruct((n, out_pad), jnp.float32),
      grid=grid,
      in_specs=[
          pl.BlockSpec((bt, Dh), lambda ti, si: (ti, 0)),          # q     (t)
          pl.BlockSpec((Dh, bs), lambda ti, si: (0, si)),          # K^T   (s)
          pl.BlockSpec((bs, Dh), lambda ti, si: (si, 0)),          # v     (s)
          pl.BlockSpec((bt, HFe), lambda ti, si: (ti, 0)),         # q@We  (t)
          pl.BlockSpec((bt, Dh), lambda ti, si: (ti, 0)),          # skip  (t)
          pl.BlockSpec((bt, Fe, bs), lambda ti, si: (ti, 0, si)),  # edges (t,s)
          pl.BlockSpec((bt, bs), lambda ti, si: (ti, si)),         # mask  (t,s)
          pl.BlockSpec((HFe, Dh), lambda ti, si: (0, 0)),          # We fold
          pl.BlockSpec((1, Dh), lambda ti, si: (0, 0)),            # bn scale
          pl.BlockSpec((1, Dh), lambda ti, si: (0, 0)),            # bn shift
      ],
      out_specs=pl.BlockSpec((bt, out_pad), lambda ti, si: (ti, 0)),
      scratch_shapes=[
          pltpu.VMEM((bt, H, 1), jnp.float32),   # running max
          pltpu.VMEM((bt, H, 1), jnp.float32),   # running denominator
          pltpu.VMEM((bt, H, C), jnp.float32),   # running numerator
      ],
      compiler_params=pltpu.CompilerParams(
          dimension_semantics=("parallel", "arbitrary"),
          vmem_limit_bytes=vmem_limit),
  )(q, kT, v, wf, skip, e_tfs, mask, wfold2, bn_scale, bn_shift)
  return out[:, :Dh]


def transformer_conv_forward(h, e_tfs, mask, layer, bn_scale, bn_shift,
                             *, apply_bn_relu, bt, bs, vmem_limit):
  H, C, Fe = layer["heads"], layer["head_dim"], layer["edge_dim"]
  Dh, HFe = H * C, H * Fe
  q, kT, v, wf, skip = fused_projection(
      h.astype(jnp.bfloat16), layer["w_cat"], layer["b_cat"], Dh=Dh, HFe=HFe)
  return transformer_conv_attention(
      q, kT, v, wf, skip, e_tfs, mask, layer["wfold2"], bn_scale, bn_shift,
      H=H, C=C, apply_bn_relu=apply_bn_relu, bt=bt, bs=bs,
      vmem_limit=vmem_limit)


# ---------------------------------------------------------------------------
# Parameter construction (deterministic, synthetic) and forward glue.
# ---------------------------------------------------------------------------
def _init_linear(key, fin, fout, bias=True):
  kw, kb = jax.random.split(key)
  s = 1.0 / math.sqrt(fin)
  w = jax.random.uniform(kw, (fin, fout), jnp.float32, -s, s)
  if bias:
    b = jax.random.uniform(kb, (1, fout), jnp.float32, -s, s)
  else:
    b = jnp.zeros((1, fout), jnp.float32)
  return w, b


def init_transformer_conv(key, in_channels, head_dim, heads, edge_dim):
  C, H, Fe = head_dim, heads, edge_dim
  Dh = H * C
  keys = jax.random.split(key, 5)
  wq, bq = _init_linear(keys[0], in_channels, Dh)
  wk, bk = _init_linear(keys[1], in_channels, Dh)
  wv, bv = _init_linear(keys[2], in_channels, Dh)
  we, _ = _init_linear(keys[3], edge_dim, Dh, bias=False)
  wskip, bskip = _init_linear(keys[4], in_channels, Dh)

  inv_sqrt_c = 1.0 / math.sqrt(C)
  wq_s, bq_s = wq * inv_sqrt_c, bq * inv_sqrt_c      # fold 1/sqrt(C) into q

  # Block-diagonal (per-head) edge-fold weight:
  #   wfold_bd[h*C+c, h*Fe+f] = We[f, h*C+c]
  wfold_bd = jnp.zeros((Dh, H * Fe), jnp.float32)
  for h in range(H):
    wfold_bd = wfold_bd.at[h * C:(h + 1) * C, h * Fe:(h + 1) * Fe].set(
        we[:, h * C:(h + 1) * C].T)
  w_wf = wq_s @ wfold_bd              # fold the edge-query projection into Wq
  b_wf = bq_s @ wfold_bd

  w_cat = jnp.concatenate([wq_s, wk, wv, wskip, w_wf], axis=1)
  b_cat = jnp.concatenate([bq_s, bk, bv, bskip, b_wf], axis=1)
  return {"w_cat": w_cat.astype(jnp.bfloat16), "b_cat": b_cat,
          "wfold2": wfold_bd.T.astype(jnp.bfloat16),   # [H*Fe, Dh]
          "heads": H, "head_dim": C, "edge_dim": Fe}


def init_graph_transformer(key, in_channels, hidden_channels, out_channels,
                           num_layers, num_heads):
  keys = jax.random.split(key, num_layers)
  layers = [init_transformer_conv(keys[0], in_channels,
                                  hidden_channels // num_heads, num_heads,
                                  in_channels)]
  for i in range(num_layers - 2):
    layers.append(init_transformer_conv(keys[1 + i], hidden_channels,
                                        hidden_channels // num_heads,
                                        num_heads, in_channels))
  layers.append(init_transformer_conv(keys[-1], hidden_channels,
                                      out_channels // num_heads, num_heads,
                                      in_channels))
  # BatchNorm1d defaults (gamma=1, beta=0, running stats), eval mode -> affine.
  eps = 1e-5
  bns = []
  for _ in range(num_layers - 1):
    gamma = jnp.ones((1, hidden_channels), jnp.float32)
    beta = jnp.zeros((1, hidden_channels), jnp.float32)
    rmean = jnp.zeros((1, hidden_channels), jnp.float32)
    rvar = jnp.ones((1, hidden_channels), jnp.float32)
    scale = gamma / jnp.sqrt(rvar + eps)
    shift = beta - rmean * scale
    bns.append((scale, shift))
  return layers, bns


def graph_transformer_forward(x, edge_index, edge_attr, layers, bns):
  """x: [N, Fin], edge_index: [2, E] (src, tgt), edge_attr: [E, Fe]."""
  n = x.shape[0]
  fe = edge_attr.shape[1]
  n_pad = _round_up(n, 128)
  src, tgt = edge_index[0], edge_index[1]

  # Densify once (XLA glue reused by every layer):
  #   mask[t, s] = 1 iff edge s -> t ; e_tfs[t, f, s] = feature f of edge s -> t.
  mask = (jnp.zeros((n_pad, n_pad), jnp.float32)
          .at[tgt, src].set(1.0).astype(jnp.bfloat16))
  edense = jnp.zeros((n_pad, n_pad, fe), jnp.float32).at[tgt, src].set(edge_attr)
  e_tfs = jnp.transpose(edense, (0, 2, 1)).astype(jnp.bfloat16)  # [N, Fe, N]
  # TODO(synk): for large sparse graphs replace the O(N^2) densification with a
  # CSR / scalar-prefetch (PrefetchScalarGridSpec) gather path and fuse the
  # layer stack so e_tfs / mask are streamed from HBM only once.

  big_vmem, vmem_limit = _chip_defaults()
  bt = 128 if n_pad >= 256 else 64     # >=2 parallel target blocks (v7x 2 TCs)
  if big_vmem and n_pad % 512 == 0:
    bs = 512                           # 128 MiB VMEM parts: bigger source tiles
  elif n_pad % 256 == 0:
    bs = 256
  else:
    bs = 128

  h = jnp.zeros((n_pad, x.shape[1]), jnp.float32).at[:n].set(x)
  for i, layer in enumerate(layers[:-1]):
    scale, shift = bns[i]
    h = transformer_conv_forward(h, e_tfs, mask, layer, scale, shift,
                                 apply_bn_relu=True, bt=bt, bs=bs,
                                 vmem_limit=vmem_limit)
    # F.dropout(training=False) -> no-op
  last = layers[-1]
  dh_last = last["heads"] * last["head_dim"]
  h = transformer_conv_forward(h, e_tfs, mask, last,
                               jnp.ones((1, dh_last), jnp.float32),
                               jnp.zeros((1, dh_last), jnp.float32),
                               apply_bn_relu=False, bt=bt, bs=bs,
                               vmem_limit=vmem_limit)
  return h[:n], edge_attr


if __name__ == "__main__":
  # Small synthetic graph.
  N = 16            # nodes
  in_channels = 8
  hidden_channels = 32
  out_channels = 16
  num_layers = 3
  num_heads = 4
  dropout = 0.5     # inference mode -> no-op

  key = jax.random.PRNGKey(0)
  kx, ke, kp = jax.random.split(key, 3)

  # Each node i receives edges from (i-1) mod N and (i+2) mod N -> E = 2N edges.
  src = jnp.concatenate([(jnp.arange(N) - 1) % N, (jnp.arange(N) + 2) % N])
  tgt = jnp.concatenate([jnp.arange(N), jnp.arange(N)])
  edge_index = jnp.stack([src, tgt]).astype(jnp.int32)        # [2, E]
  E = edge_index.shape[1]

  x = jax.random.normal(kx, (N, in_channels), jnp.float32)
  edge_attr = jax.random.normal(ke, (E, in_channels), jnp.float32)

  layers, bns = init_graph_transformer(kp, in_channels, hidden_channels,
                                       out_channels, num_layers, num_heads)

  out, edge_attr_out = graph_transformer_forward(x, edge_index, edge_attr,
                                                 layers, bns)
  out = jax.block_until_ready(out)
  edge_attr_out = jax.block_until_ready(edge_attr_out)

  assert out.shape == (N, out_channels), out.shape
  assert edge_attr_out.shape == (E, in_channels)
  assert bool(jnp.all(jnp.isfinite(out)))
  print("KERNEL_OK")
</pallas_src>

<mosaic_0001>
module attributes {stable_mosaic.version = 11 : i64} {
  func.func @_fused_proj_kernel(%arg0: i32, %arg1: memref<128x8xbf16, #tpu.memory_space<vmem>>, %arg2: memref<8x160xbf16, #tpu.memory_space<vmem>>, %arg3: memref<1x160xf32, #tpu.memory_space<vmem>>, %arg4: memref<128x32xbf16, #tpu.memory_space<vmem>>, %arg5: memref<32x128xbf16, #tpu.memory_space<vmem>>, %arg6: memref<128x32xbf16, #tpu.memory_space<vmem>>, %arg7: memref<128x32xbf16, #tpu.memory_space<vmem>>, %arg8: memref<128x32xf32, #tpu.memory_space<vmem>>) attributes {dimension_semantics = [#tpu.dimension_semantics<parallel>], iteration_bounds = array<i64: 1>, scalar_prefetch = 0 : i64, scratch_operands = 0 : i64, tpu.core_type = #tpu.core_type<tc>, window_params = [{transform_indices = @transform_0, window_bounds = array<i64: 128, 8>}, {pipeline_mode = #tpu.pipeline_mode<synchronous>, transform_indices = @transform_1, window_bounds = array<i64: 8, 160>}, {pipeline_mode = #tpu.pipeline_mode<synchronous>, transform_indices = @transform_2, window_bounds = array<i64: 1, 160>}, {transform_indices = @transform_3, window_bounds = array<i64: 128, 32>}, {transform_indices = @transform_4, window_bounds = array<i64: 32, 128>}, {transform_indices = @transform_5, window_bounds = array<i64: 128, 32>}, {transform_indices = @transform_6, window_bounds = array<i64: 128, 32>}, {transform_indices = @transform_7, window_bounds = array<i64: 128, 32>}]} {
    %c0 = arith.constant 0 : index
    %c0_0 = arith.constant 0 : index
    %0 = vector.load %arg1[%c0, %c0_0] : memref<128x8xbf16, #tpu.memory_space<vmem>>, vector<128x8xbf16>
    %c0_1 = arith.constant 0 : index
    %c0_2 = arith.constant 0 : index
    %1 = vector.load %arg2[%c0_1, %c0_2] : memref<8x160xbf16, #tpu.memory_space<vmem>>, vector<8x160xbf16>
    %cst = arith.constant dense<0.000000e+00> : vector<128x160xf32>
    %2 = tpu.matmul %0, %1, %cst {dimension_numbers = #tpu.dot_dimension_numbers<[1], [0], [0], [1], [0, 0, 1, 1], [], []>} : vector<128x8xbf16>, vector<8x160xbf16>, vector<128x160xf32> -> vector<128x160xf32>
    %c0_3 = arith.constant 0 : index
    %c0_4 = arith.constant 0 : index
    %3 = vector.load %arg3[%c0_3, %c0_4] : memref<1x160xf32, #tpu.memory_space<vmem>>, vector<1x160xf32>
    %4 = vector.broadcast %3 : vector<1x160xf32> to vector<128x160xf32>
    %5 = arith.addf %2, %4 : vector<128x160xf32>
    %6 = vector.extract_strided_slice %5 {offsets = [0, 0], sizes = [128, 32], strides = [1, 1]} : vector<128x160xf32> to vector<128x32xf32>
    %7 = arith.truncf %6 : vector<128x32xf32> to vector<128x32xbf16>
    %c0_5 = arith.constant 0 : index
    %c0_6 = arith.constant 0 : index
    %8 = vector.load %arg4[%c0_5, %c0_6] : memref<128x32xbf16, #tpu.memory_space<vmem>>, vector<128x32xbf16>
    tpu.vector_store %arg4[%c0_5, %c0_6], %7 {strides = array<i32>} : memref<128x32xbf16, #tpu.memory_space<vmem>>, vector<128x32xbf16>,
    %9 = vector.extract_strided_slice %5 {offsets = [0, 32], sizes = [128, 32], strides = [1, 1]} : vector<128x160xf32> to vector<128x32xf32>
    %10 = tpu.transpose %9, [1, 0] : vector<128x32xf32> -> vector<32x128xf32>
    %11 = arith.truncf %10 : vector<32x128xf32> to vector<32x128xbf16>
    %c0_7 = arith.constant 0 : index
    %c0_8 = arith.constant 0 : index
    %12 = vector.load %arg5[%c0_7, %c0_8] : memref<32x128xbf16, #tpu.memory_space<vmem>>, vector<32x128xbf16>
    tpu.vector_store %arg5[%c0_7, %c0_8], %11 {strides = array<i32>} : memref<32x128xbf16, #tpu.memory_space<vmem>>, vector<32x128xbf16>,
    %13 = vector.extract_strided_slice %5 {offsets = [0, 64], sizes = [128, 32], strides = [1, 1]} : vector<128x160xf32> to vector<128x32xf32>
    %14 = arith.truncf %13 : vector<128x32xf32> to vector<128x32xbf16>
    %c0_9 = arith.constant 0 : index
    %c0_10 = arith.constant 0 : index
    %15 = vector.load %arg6[%c0_9, %c0_10] : memref<128x32xbf16, #tpu.memory_space<vmem>>, vector<128x32xbf16>
    tpu.vector_store %arg6[%c0_9, %c0_10], %14 {strides = array<i32>} : memref<128x32xbf16, #tpu.memory_space<vmem>>, vector<128x32xbf16>,
    %16 = vector.extract_strided_slice %5 {offsets = [0, 96], sizes = [128, 32], strides = [1, 1]} : vector<128x160xf32> to vector<128x32xf32>
    %c0_11 = arith.constant 0 : index
    %c0_12 = arith.constant 0 : index
    %17 = vector.load %arg8[%c0_11, %c0_12] : memref<128x32xf32, #tpu.memory_space<vmem>>, vector<128x32xf32>
    tpu.vector_store %arg8[%c0_11, %c0_12], %16 {strides = array<i32>} : memref<128x32xf32, #tpu.memory_space<vmem>>, vector<128x32xf32>,
    %18 = vector.extract_strided_slice %5 {offsets = [0, 128], sizes = [128, 32], strides = [1, 1]} : vector<128x160xf32> to vector<128x32xf32>
    %19 = arith.truncf %18 : vector<128x32xf32> to vector<128x32xbf16>
    %c0_13 = arith.constant 0 : index
    %c0_14 = arith.constant 0 : index
    %20 = vector.load %arg7[%c0_13, %c0_14] : memref<128x32xbf16, #tpu.memory_space<vmem>>, vector<128x32xbf16>
    tpu.vector_store %arg7[%c0_13, %c0_14], %19 {strides = array<i32>} : memref<128x32xbf16, #tpu.memory_space<vmem>>, vector<128x32xbf16>,
    return
  }
  func.func @transform_0(%arg0: i32) -> (i32, i32) {
    %c0_i32 = arith.constant 0 : i32
    %c0_i32_0 = arith.constant 0 : i32
    return %arg0, %c0_i32 : i32, i32
  }
  func.func @transform_1(%arg0: i32) -> (i32, i32) {
    %c0_i32 = arith.constant 0 : i32
    %c0_i32_0 = arith.constant 0 : i32
    %c0_i32_1 = arith.constant 0 : i32
    return %c0_i32, %c0_i32_0 : i32, i32
  }
  func.func @transform_2(%arg0: i32) -> (i32, i32) {
    %c0_i32 = arith.constant 0 : i32
    %c0_i32_0 = arith.constant 0 : i32
    %c0_i32_1 = arith.constant 0 : i32
    return %c0_i32, %c0_i32_0 : i32, i32
  }
  func.func @transform_3(%arg0: i32) -> (i32, i32) {
    %c0_i32 = arith.constant 0 : i32
    %c0_i32_0 = arith.constant 0 : i32
    return %arg0, %c0_i32 : i32, i32
  }
  func.func @transform_4(%arg0: i32) -> (i32, i32) {
    %c0_i32 = arith.constant 0 : i32
    %c0_i32_0 = arith.constant 0 : i32
    return %c0_i32, %arg0 : i32, i32
  }
  func.func @transform_5(%arg0: i32) -> (i32, i32) {
    %c0_i32 = arith.constant 0 : i32
    %c0_i32_0 = arith.constant 0 : i32
    return %arg0, %c0_i32 : i32, i32
  }
  func.func @transform_6(%arg0: i32) -> (i32, i32) {
    %c0_i32 = arith.constant 0 : i32
    %c0_i32_0 = arith.constant 0 : i32
    return %arg0, %c0_i32 : i32, i32
  }
  func.func @transform_7(%arg0: i32) -> (i32, i32) {
    %c0_i32 = arith.constant 0 : i32
    %c0_i32_0 = arith.constant 0 : i32
    return %arg0, %c0_i32 : i32, i32
  }
}

</mosaic_0001>

<bundles_post_ra>
// kernel: tpu_custom_call.1
= control target key start
LH: loop header
LB: loop body
LE: loop exit
PB: predicated region body
PF: predicated region fallthrough
CT: control target
= control target key end

     0   :  { %vm120_vm0 = vcmask 1043456   ;;  %v862_v3 = vmov 0   ;;  %vm95_vm1 = vcmask 64512   ;;  %s1390_s0 = inlined_call_operand.vmem [shape: bf16[128,8], index: 0, kind: input, shape index: {}]   ;;  %s1391_s1 = inlined_call_operand.vmem [shape: bf16[8,160], index: 1, kind: input, shape index: {}]   ;;  %s1392_s2 = inlined_call_operand.vmem [shape: f32[1,160], index: 2, kind: input, shape index: {}]   ;;  %s1393_s3 = inlined_call_operand.vmem [shape: bf16[128,32], index: 3, kind: output, shape index: {0}]   ;;  %s1394_s4 = inlined_call_operand.hbm [shape: bf16[32,128], index: 4, kind: output, shape index: {1}]   ;;  %s1395_s5 = inlined_call_operand.vmem [shape: bf16[128,32], index: 5, kind: output, shape index: {2}]   ;;  %s1396_s6 = inlined_call_operand.vmem [shape: bf16[128,32], index: 6, kind: output, shape index: {3}]   ;;  %s1397_s7 = inlined_call_operand.vmem [shape: f32[128,32], index: 7, kind: output, shape index: {4}]  }
   0x1   :  { %v37_v0 = vld [vmem:[%s1391_s1] sm:$0xff]  ;;  %159 = vmatprep.mubr.bf16.mxu0 %v862_v3  ;;  %199 = vmatprep.mubr.bf16.mxu1 %v862_v3 }
   0x2   :  { %v687_v1 = vcombine.high %v37_v0, %v37_v0  ;;  %v686_v2 = vcombine.low %v37_v0, %v37_v0  ;;  %v830_v4 = vld [vmem:[%s1390_s0] sm:$0xff]  }
   0x3   :  { %v831_v6 = vld [vmem:[%s1390_s0 + $0x20] sm:$0xff]  }
   0x4   :  { %688 = vmatprep.subr.msk.bf16.mxu0 %vm120_vm0, %v687_v1  ;;  %v122_v5 = vsel %vm120_vm0, %v686_v2, 0  ;;  %780 = vmatprep.subr.msk.bf16.mxu1 %vm120_vm0, %v687_v1 }
   0x5   :  { %128 = vmatpush1.bf16.msra.mxu0 %v122_v5  ;;  %781 = vmatpush1.bf16.msra.mxu1 %v122_v5 }
   0x8   :  { %689 = vmatmul.mubr.msk.bf16.vlgmr.msra.gmra.mrb[0].mxu0 %vm95_vm1, %v830_v4  ;;  %693 = vmatmul.mubr.msk.bf16.vlgmr.msra.gmra.mrb[0].mxu1 %vm95_vm1, %v831_v6 }
   0x9   :  { %169 = vmatprep.mubr.bf16.mxu0 %v862_v3  ;;  %209 = vmatprep.mubr.bf16.mxu1 %v862_v3 }
   0xa   :  { %13 = vsyncpa [#allocation3], 0  ;;  %v832_v7 = vld [vmem:[%s1390_s0 + $0x8] sm:$0xff]   ;;  %v834_v9 = vld [vmem:[%s1390_s0 + $0x10] sm:$0xff]   ;;  %v40_v13 = vlaneseq  ;;  %vm304_vm2 = vcmask 257024   ;;  %s864_s27 = smov 96  }
   0xb   :  { %v833_v8 = vld [vmem:[%s1390_s0 + $0x28] sm:$0xff]   ;;  %v835_v10 = vld [vmem:[%s1390_s0 + $0x30] sm:$0xff]   ;;  %v836_v11 = vld [vmem:[%s1390_s0 + $0x18] sm:$0xff]   ;;  %s865_s28 = smov 64   ;;  %vm549_vm3 = vcmask 261120   ;;  %s866_s21 = smov [#allocation2]  }
   0xc   :  { %v837_v12 = vld [vmem:[%s1390_s0 + $0x38] sm:$0xff]   ;;  %v41_v14 = vshrl.u32 %v40_v13, 7  ;;  %v38_v16 = vld [vmem:[%s1392_s2] sm:$0x3]  ;;  %s863_s0 = smov 32   ;;  %s653_s22 = sshll.u32 %s866_s21, 4  ;;  %s654_s22 = int_to_ptr.vmem [resolvable:$true] %s653_s22 }
   0xd   :  { %s838_s23 = scalar_lea.vmem %s654_s22, 256  ;;  %p843_p1 = scmp.lt.s32.totalorder %s654_s22, %s654_s22 }
   0xe   :  { %v42_v15 = vsub.s32 0, %v41_v14  ;;  %v46_v17 = vsub.s32 1, %v41_v14  ;;  %p839_p0 = scmp.ne.s32.totalorder %s654_s22, %s838_s23  ;;  %p844_p2 = scmp.lt.s32.totalorder %s838_s23, %s838_s23 }
  0x10   :  { %690 = vmatmul.mubr.msk.bf16.gmra.mrb[4].mxu0 %vm95_vm1, %v832_v7  ;;  %694 = vmatmul.mubr.msk.bf16.gmra.mrb[4].mxu1 %vm95_vm1, %v833_v8  ;;  %v946_v18 = vrot.slane %v38_v16, %v42_v15  ;;  %v948_v19 = vrot.slane %v38_v16, %v46_v17  ;;  %p845_p3 = por %p844_p2, %p843_p1 }
  0x11   :  { %179 = vmatprep.mubr.bf16.mxu0 %v862_v3  ;;  %219 = vmatprep.mubr.bf16.mxu1 %v862_v3 }
  0x12   :  { %p846_p4 = pnand %p845_p3, %p839_p0 }
  0x18   :  { %691 = vmatmul.mubr.msk.bf16.gmra.mrb[8].mxu0 %vm95_vm1, %v834_v9  ;;  %695 = vmatmul.mubr.msk.bf16.gmra.mrb[8].mxu1 %vm95_vm1, %v835_v10 }
  0x19   :  { %189 = vmatprep.mubr.bf16.mxu0 %v862_v3  ;;  %229 = vmatprep.mubr.bf16.mxu1 %v862_v3 }
  0x20   :  { %692 = vmatmul.mubr.msk.bf16.gmra.mrb[12].mxu0 %vm95_vm1, %v836_v11  ;;  %696 = vmatmul.mubr.msk.bf16.gmra.mrb[12].mxu1 %vm95_vm1, %v837_v12 }
  0xdb   :  { %v161_v20 = vpop.f32.mrb[0].mxu0  ;;  %v201_v21 = vpop.f32.mrb[0].mxu1 }
  0xdc   :  { %v162_v22 = vadd.f32 %v161_v20, %v946_v18  ;;  %v163_v23 = vpop.f32.mrb[1].mxu0  ;;  %v952_v24 = vadd.f32 %v201_v21, %v946_v18  ;;  %v203_v25 = vpop.f32.mrb[1].mxu1 }
  0xdd   :  { %v164_v26 = vadd.f32 %v163_v23, %v948_v19  ;;  %v165_v27 = vpop.f32.mrb[2].mxu0  ;;  %v204_v28 = vadd.f32 %v203_v25, %v948_v19  ;;  %v205_v29 = vpop.f32.mrb[2].mxu1 }
  0xde   :  { %v166_v30 = vadd.f32 %v165_v27, %v946_v18  ;;  %v167_v31 = vpop.f32.mrb[3].mxu0  ;;  %501 = vrot.lane.b32.xlu1 %v162_v22, %s863_s0  ;;  %v959_v32 = vadd.f32 %v205_v29, %v946_v18  ;;  %v207_v33 = vpop.f32.mrb[3].mxu1  ;;  %v733_v34 = vpack.c.bf16 %v162_v22, %v162_v22  ;;  %v741_v35 = vpack.c.bf16 %v952_v24, %v952_v24 }
  0xdf   :  { %v753_v36 = vpack.c.bf16 %v164_v26, %v164_v26  ;;  %v168_v37 = vadd.f32 %v167_v31, %v948_v19  ;;  %v761_v38 = vpack.c.bf16 %v204_v28, %v204_v28  ;;  %v208_v39 = vadd.f32 %v207_v33, %v948_v19 }
  0xe0   :  { %v788_v40 = vpack.i.bf16 %v166_v30, %v162_v22  ;;  %305 = vst.msk [vmem:[%s1393_s3] sm:$0xf] %vm304_vm2, %v733_v34  ;;  %313 = vst.msk [vmem:[%s1393_s3 + $0x20] sm:$0xf] %vm304_vm2, %v741_v35  ;;  %v734_v41 = vpack.c.bf16 %v166_v30, %v166_v30  ;;  %v975_v42 = vpack.c.bf16 %v959_v32, %v959_v32 }
  0xe1   :  { %630 = vst.msk [vmem:[%s1396_s6] sm:$0xf] %vm304_vm2, %v753_v36  ;;  %v754_v43 = vpack.c.bf16 %v168_v37, %v168_v37  ;;  %638 = vst.msk [vmem:[%s1396_s6 + $0x20] sm:$0xf] %vm304_vm2, %v761_v38  ;;  %v762_v44 = vpack.c.bf16 %v208_v39, %v208_v39  ;;  %v793_v45 = vpack.i.bf16 %v959_v32, %v952_v24 }
  0xe2   :  { %789 = vrot.lane.b32.xlu0 %v788_v40, %s864_s27  ;;  %437 = vrot.lane.b32.xlu1 %v733_v34, %s865_s28  ;;  %306 = vst.msk [vmem:[%s1393_s3 + $0x4] sm:$0xf] %vm304_vm2, %v734_v41  ;;  %314 = vst.msk [vmem:[%s1393_s3 + $0x24] sm:$0xf] %vm304_vm2, %v975_v42 }
  0xe3   :  { %631 = vst.msk [vmem:[%s1396_s6 + $0x4] sm:$0xf] %vm304_vm2, %v754_v43  ;;  %639 = vst.msk [vmem:[%s1396_s6 + $0x24] sm:$0xf] %vm304_vm2, %v762_v44  ;;  %v171_v46 = vpop.f32.mrb[4].mxu0  ;;  %v211_v47 = vpop.f32.mrb[4].mxu1 }
  0xe4   :  { %v1007_v48 = vadd.f32 %v171_v46, %v946_v18  ;;  %v173_v49 = vpop.f32.mrb[5].mxu0  ;;  %v1010_v50 = vadd.f32 %v211_v47, %v946_v18  ;;  %v213_v51 = vpop.f32.mrb[5].mxu1 }
  0xe5   :  { %v174_v52 = vadd.f32 %v173_v49, %v948_v19  ;;  %v175_v53 = vpop.f32.mrb[6].mxu0  ;;  %v214_v54 = vadd.f32 %v213_v51, %v948_v19  ;;  %v215_v55 = vpop.f32.mrb[6].mxu1 }
  0xe6   :  { %794 = vrot.lane.b32.xlu0 %v793_v45, %s864_s27  ;;  %453 = vrot.lane.b32.xlu1 %v741_v35, %s865_s28  ;;  %v1017_v56 = vadd.f32 %v175_v53, %v946_v18  ;;  %v1020_v57 = vadd.f32 %v215_v55, %v946_v18  ;;  %v177_v58 = vpop.f32.mrb[7].mxu0  ;;  %v217_v59 = vpop.f32.mrb[7].mxu1  ;;  %v1024_v60 = vpack.c.bf16 %v1007_v48, %v1007_v48 }
  0xe7   :  { %v755_v61 = vpack.c.bf16 %v174_v52, %v174_v52  ;;  %v763_v62 = vpack.c.bf16 %v214_v54, %v214_v54  ;;  %v178_v63 = vadd.f32 %v177_v58, %v948_v19  ;;  %v218_v0 = vadd.f32 %v217_v59, %v948_v19 }
  0xe8   :  { %v798_v1 = vpack.i.bf16 %v1017_v56, %v1007_v48  ;;  %307 = vst.msk [vmem:[%s1393_s3 + $0x8] sm:$0xf] %vm304_vm2, %v1024_v60  ;;  %v1037_v2 = vpack.c.bf16 %v1010_v50, %v1010_v50  ;;  %v1041_v3 = vpack.c.bf16 %v1017_v56, %v1017_v56  ;;  %v1053_v6 = vpack.c.bf16 %v1020_v57, %v1020_v57 }
  0xe9   :  { %632 = vst.msk [vmem:[%s1396_s6 + $0x8] sm:$0xf] %vm304_vm2, %v755_v61  ;;  %640 = vst.msk [vmem:[%s1396_s6 + $0x28] sm:$0xf] %vm304_vm2, %v763_v62  ;;  %v756_v4 = vpack.c.bf16 %v178_v63, %v178_v63  ;;  %v764_v5 = vpack.c.bf16 %v218_v0, %v218_v0  ;;  %v803_v62 = vpack.i.bf16 %v1020_v57, %v1010_v50 }
  0xea   :  { %503 = vrot.lane.b32.xlu1 %v166_v30, %s863_s0  ;;  %799 = vrot.lane.b32.xlu0 %v798_v1, %s864_s27  ;;  %315 = vst.msk [vmem:[%s1393_s3 + $0x28] sm:$0xf] %vm304_vm2, %v1037_v2  ;;  %308 = vst.msk [vmem:[%s1393_s3 + $0xc] sm:$0xf] %vm304_vm2, %v1041_v3 }
  0xeb   :  { %633 = vst.msk [vmem:[%s1396_s6 + $0xc] sm:$0xf] %vm304_vm2, %v756_v4  ;;  %641 = vst.msk [vmem:[%s1396_s6 + $0x2c] sm:$0xf] %vm304_vm2, %v764_v5  ;;  %v181_v7 = vpop.f32.mrb[8].mxu0  ;;  %v221_v8 = vpop.f32.mrb[8].mxu1 }
  0xec   :  { %316 = vst.msk [vmem:[%s1393_s3 + $0x2c] sm:$0xf] %vm304_vm2, %v1053_v6  ;;  %v1081_v9 = vadd.f32 %v181_v7, %v946_v18  ;;  %v183_v10 = vpop.f32.mrb[9].mxu0  ;;  %v1084_v11 = vadd.f32 %v221_v8, %v946_v18  ;;  %v223_v12 = vpop.f32.mrb[9].mxu1 }
  0xed   :  { %v184_v13 = vadd.f32 %v183_v10, %v948_v19  ;;  %v185_v14 = vpop.f32.mrb[10].mxu0  ;;  %v224_v15 = vadd.f32 %v223_v12, %v948_v19  ;;  %v225_v16 = vpop.f32.mrb[10].mxu1 }
  0xee   :  { %439 = vrot.lane.b32.xlu1 %v734_v41, %s865_s28  ;;  %v1090_v17 = vadd.f32 %v185_v14, %v946_v18  ;;  %v187_v20 = vpop.f32.mrb[11].mxu0  ;;  %v1093_v21 = vadd.f32 %v225_v16, %v946_v18  ;;  %v227_v22 = vpop.f32.mrb[11].mxu1  ;;  %v1097_v23 = vpack.c.bf16 %v1081_v9, %v1081_v9  ;;  %v1101_v25 = vpack.c.bf16 %v1084_v11, %v1084_v11 }
  0xef   :  { %v757_v26 = vpack.c.bf16 %v184_v13, %v184_v13  ;;  %v188_v27 = vadd.f32 %v187_v20, %v948_v19  ;;  %v765_v28 = vpack.c.bf16 %v224_v15, %v224_v15  ;;  %v228_v29 = vadd.f32 %v227_v22, %v948_v19 }
  0xf0   :  { %v808_v30 = vpack.i.bf16 %v1090_v17, %v1081_v9  ;;  %309 = vst.msk [vmem:[%s1393_s3 + $0x10] sm:$0xf] %vm304_vm2, %v1097_v23  ;;  %v813_v31 = vpack.i.bf16 %v1093_v21, %v1084_v11  ;;  %317 = vst.msk [vmem:[%s1393_s3 + $0x30] sm:$0xf] %vm304_vm2, %v1101_v25  ;;  %v738_v33 = vpack.c.bf16 %v1090_v17, %v1090_v17 }
  0xf1   :  { %v746_v34 = vpack.c.bf16 %v1093_v21, %v1093_v21  ;;  %634 = vst.msk [vmem:[%s1396_s6 + $0x10] sm:$0xf] %vm304_vm2, %v757_v26  ;;  %v758_v35 = vpack.c.bf16 %v188_v27, %v188_v27  ;;  %642 = vst.msk [vmem:[%s1396_s6 + $0x30] sm:$0xf] %vm304_vm2, %v765_v28  ;;  %v766_v36 = vpack.c.bf16 %v228_v29, %v228_v29 }
  0xf2   :  { %455 = vrot.lane.b32.xlu1 %v975_v42, %s865_s28  ;;  %814 = vrot.lane.b32.xlu0 %v813_v31, %s864_s27  ;;  %310 = vst.msk [vmem:[%s1393_s3 + $0x14] sm:$0xf] %vm304_vm2, %v738_v33 }
  0xf3   :  { %318 = vst.msk [vmem:[%s1393_s3 + $0x34] sm:$0xf] %vm304_vm2, %v746_v34  ;;  %635 = vst.msk [vmem:[%s1396_s6 + $0x14] sm:$0xf] %vm304_vm2, %v758_v35  ;;  %v191_v37 = vpop.f32.mrb[12].mxu0  ;;  %v231_v38 = vpop.f32.mrb[12].mxu1 }
  0xf4   :  { %643 = vst.msk [vmem:[%s1396_s6 + $0x34] sm:$0xf] %vm304_vm2, %v766_v36  ;;  %v192_v39 = vadd.f32 %v191_v37, %v946_v18  ;;  %v193_v40 = vpop.f32.mrb[13].mxu0  ;;  %v232_v41 = vadd.f32 %v231_v38, %v946_v18  ;;  %v233_v42 = vpop.f32.mrb[13].mxu1 }
  0xf5   :  { %v194_v43 = vadd.f32 %v193_v40, %v948_v19  ;;  %v195_v44 = vpop.f32.mrb[14].mxu0  ;;  %v234_v45 = vadd.f32 %v233_v42, %v948_v19  ;;  %v235_v46 = vpop.f32.mrb[14].mxu1 }
  0xf6   :  { %505 = vrot.lane.b32.xlu1 %v1007_v48, %s863_s0  ;;  %v196_v47 = vadd.f32 %v195_v44, %v946_v18  ;;  %v197_v49 = vpop.f32.mrb[15].mxu0  ;;  %v1158_v51 = vadd.f32 %v235_v46, %v946_v18  ;;  %v237_v52 = vpop.f32.mrb[15].mxu1  ;;  %v739_v53 = vpack.c.bf16 %v192_v39, %v192_v39  ;;  %v747_v54 = vpack.c.bf16 %v232_v41, %v232_v41 }
  0xf7   :  { %v759_v55 = vpack.c.bf16 %v194_v43, %v194_v43  ;;  %v198_v58 = vadd.f32 %v197_v49, %v948_v19  ;;  %v767_v59 = vpack.c.bf16 %v234_v45, %v234_v45  ;;  %v238_v61 = vadd.f32 %v237_v52, %v948_v19 }
  0xf8   :  { %515 = vrot.lane.b32.xlu0 %v196_v47, %s863_s0  ;;  %v818_v48 = vpack.i.bf16 %v196_v47, %v192_v39  ;;  %311 = vst.msk [vmem:[%s1393_s3 + $0x18] sm:$0xf] %vm304_vm2, %v739_v53  ;;  %319 = vst.msk [vmem:[%s1393_s3 + $0x38] sm:$0xf] %vm304_vm2, %v747_v54  ;;  %v740_v18 = vpack.c.bf16 %v196_v47, %v196_v47  ;;  %v748_v19 = vpack.c.bf16 %v1158_v51, %v1158_v51 }
  0xf9   :  { %636 = vst.msk [vmem:[%s1396_s6 + $0x18] sm:$0xf] %vm304_vm2, %v759_v55  ;;  %v760_v63 = vpack.c.bf16 %v198_v58, %v198_v58  ;;  %644 = vst.msk [vmem:[%s1396_s6 + $0x38] sm:$0xf] %vm304_vm2, %v767_v59  ;;  %v768_v0 = vpack.c.bf16 %v238_v61, %v238_v61 }
  0xfa   :  { %804 = vrot.lane.b32.xlu1 %v803_v62, %s864_s27  ;;  %312 = vst.msk [vmem:[%s1393_s3 + $0x1c] sm:$0xf] %vm304_vm2, %v740_v18  ;;  %320 = vst.msk [vmem:[%s1393_s3 + $0x3c] sm:$0xf] %vm304_vm2, %v748_v19 }
  0xfb   :  { %637 = vst.msk [vmem:[%s1396_s6 + $0x1c] sm:$0xf] %vm304_vm2, %v760_v63  ;;  %645 = vst.msk [vmem:[%s1396_s6 + $0x3c] sm:$0xf] %vm304_vm2, %v768_v0 }
  0xfe   :  { %441 = vrot.lane.b32.xlu1 %v1024_v60, %s865_s28 }
 0x102   :  { %457 = vrot.lane.b32.xlu1 %v1037_v2, %s865_s28 }
 0x106   :  { %507 = vrot.lane.b32.xlu1 %v1017_v56, %s863_s0  ;;  %v823_v56 = vpack.i.bf16 %v1158_v51, %v232_v41 }
 0x10a   :  { %443 = vrot.lane.b32.xlu1 %v1041_v3, %s865_s28 }
 0x10e   :  { %459 = vrot.lane.b32.xlu1 %v1053_v6, %s865_s28 }
 0x112   :  { %809 = vrot.lane.b32.xlu1 %v808_v30, %s864_s27 }
 0x116   :  { %445 = vrot.lane.b32.xlu1 %v1097_v23, %s865_s28 }
 0x11a   :  { %461 = vrot.lane.b32.xlu1 %v1101_v25, %s865_s28 }
 0x11e   :  { %447 = vrot.lane.b32.xlu1 %v738_v33, %s865_s28 }
 0x122   :  { %463 = vrot.lane.b32.xlu1 %v746_v34, %s865_s28 }
 0x126   :  { %819 = vrot.lane.b32.xlu1 %v818_v48, %s864_s27 }
 0x12a   :  { %509 = vrot.lane.b32.xlu1 %v1081_v9, %s863_s0 }
 0x12e   :  { %511 = vrot.lane.b32.xlu1 %v1090_v17, %s863_s0 }
 0x132   :  { %513 = vrot.lane.b32.xlu1 %v192_v39, %s863_s0 }
 0x136   :  { %824 = vrot.lane.b32.xlu1 %v823_v56, %s864_s27 }
 0x13a   :  { %517 = vrot.lane.b32.xlu1 %v952_v24, %s863_s0 }
 0x13e   :  { %519 = vrot.lane.b32.xlu1 %v959_v32, %s863_s0 }
 0x142   :  { %521 = vrot.lane.b32.xlu1 %v1010_v50, %s863_s0 }
 0x146   :  { %523 = vrot.lane.b32.xlu1 %v1020_v57, %s863_s0 }
 0x14a   :  { %525 = vrot.lane.b32.xlu1 %v1084_v11, %s863_s0 }
 0x14e   :  { %527 = vrot.lane.b32.xlu1 %v1093_v21, %s863_s0 }
 0x150   :  { %v502_v60 = vpop.permute.xlu1 %501 }
 0x151   :  { %550 = vst.msk [vmem:[%s1397_s7] sm:$0xff] %vm549_vm3, %v502_v60 }
 0x152   :  { %529 = vrot.lane.b32.xlu1 %v232_v41, %s863_s0 }
 0x154   :  { %v790_v24 = vpop.permute.xlu0 %789  ;;  %v438_v32 = vpop.permute.xlu1 %437 }
 0x155   :  { %485 = vst.msk [vmem:[%s1395_s5] sm:$0xf] %vm304_vm2, %v438_v32  ;;  %v791_v50 = vunpack.i.l.bf16 %v790_v24  ;;  %v792_v2 = vunpack.i.h.bf16 %v790_v24 }
 0x156   :  { %449 = vrot.lane.b32.xlu1 %v739_v53, %s865_s28 }
 0x157   :  { %385 = vxpose.xlu0.b32.start [1/16] (narrow) %v791_v50, 32 }
 0x158   :  { %v1247_v57 = vpop.permute.xlu0 %794  ;;  %v454_v1 = vpop.permute.xlu1 %453 }
 0x159   :  { %493 = vst.msk [vmem:[%s1395_s5 + $0x20] sm:$0xf] %vm304_vm2, %v454_v1  ;;  %v796_v34 = vunpack.i.l.bf16 %v1247_v57  ;;  %v797_v36 = vunpack.i.h.bf16 %v1247_v57 }
 0x15a   :  { %465 = vrot.lane.b32.xlu1 %v747_v54, %s865_s28 }
 0x15b   :  { %386 = vxpose.xlu0.b32.cont [2/16] (narrow) %v792_v2, 32 }
 0x15c   :  { %v504_v3 = vpop.permute.xlu1 %503  ;;  %v800_v4 = vpop.permute.xlu0 %799 }
 0x15d   :  { %551 = vst.msk [vmem:[%s1397_s7 + $0x8] sm:$0xff] %vm549_vm3, %v504_v3  ;;  %v801_v5 = vunpack.i.l.bf16 %v800_v4  ;;  %v802_v6 = vunpack.i.h.bf16 %v800_v4 }
 0x15e   :  { %451 = vrot.lane.b32.xlu1 %v740_v18, %s865_s28 }
 0x15f   :  { %387 = vxpose.xlu0.b32.cont [3/16] (narrow) %v801_v5, 32 }
 0x160   :  { %v440_v7 = vpop.permute.xlu1 %439 }
 0x161   :  { %486 = vst.msk [vmem:[%s1395_s5 + $0x4] sm:$0xf] %vm304_vm2, %v440_v7 }
 0x162   :  { %467 = vrot.lane.b32.xlu1 %v748_v19, %s865_s28 }
 0x163   :  { %388 = vxpose.xlu0.b32.cont [4/16] (narrow) %v802_v6, 32 }
 0x164   :  { %v456_v8 = vpop.permute.xlu1 %455  ;;  %v815_v9 = vpop.permute.xlu0 %814 }
 0x165   :  { %494 = vst.msk [vmem:[%s1395_s5 + $0x24] sm:$0xf] %vm304_vm2, %v456_v8  ;;  %v816_v42 = vunpack.i.l.bf16 %v815_v9  ;;  %v817_v44 = vunpack.i.h.bf16 %v815_v9 }
 0x166   :  { %531 = vrot.lane.b32.xlu1 %v1158_v51, %s863_s0 }
 0x168   :  { %v506_v10 = vpop.permute.xlu1 %505 }
 0x169   :  { %552 = vst.msk [vmem:[%s1397_s7 + $0x10] sm:$0xff] %vm549_vm3, %v506_v10 }
 0x16a   :  { %v516_v11 = vpop.permute.xlu0 %515 }
 0x16b   :  { %557 = vst.msk [vmem:[%s1397_s7 + $0x38] sm:$0xff] %vm549_vm3, %v516_v11 }
 0x16c   :  { %v805_v12 = vpop.permute.xlu1 %804 }
 0x16d   :  { %v806_v38 = vunpack.i.l.bf16 %v805_v12  ;;  %v807_v40 = vunpack.i.h.bf16 %v805_v12 }
 0x170   :  { %v442_v13 = vpop.permute.xlu1 %441 }
 0x171   :  { %487 = vst.msk [vmem:[%s1395_s5 + $0x8] sm:$0xf] %vm304_vm2, %v442_v13 }
 0x174   :  { %v458_v14 = vpop.permute.xlu1 %457 }
 0x175   :  { %495 = vst.msk [vmem:[%s1395_s5 + $0x28] sm:$0xf] %vm304_vm2, %v458_v14 }
 0x178   :  { %v508_v15 = vpop.permute.xlu1 %507 }
 0x179   :  { %553 = vst.msk [vmem:[%s1397_s7 + $0x18] sm:$0xff] %vm549_vm3, %v508_v15 }
 0x17c   :  { %v444_v16 = vpop.permute.xlu1 %443 }
 0x17d   :  { %488 = vst.msk [vmem:[%s1395_s5 + $0xc] sm:$0xf] %vm304_vm2, %v444_v16 }
 0x180   :  { %v460_v17 = vpop.permute.xlu1 %459 }
 0x181   :  { %496 = vst.msk [vmem:[%s1395_s5 + $0x2c] sm:$0xf] %vm304_vm2, %v460_v17 }
 0x184   :  { %v810_v20 = vpop.permute.xlu1 %809 }
 0x185   :  { %v811_v21 = vunpack.i.l.bf16 %v810_v20  ;;  %v812_v23 = vunpack.i.h.bf16 %v810_v20 }
 0x187   :  { %389 = vxpose.xlu0.b32.cont [5/16] (narrow) %v811_v21, 32 }
 0x188   :  { %v446_v22 = vpop.permute.xlu1 %445 }
 0x189   :  { %489 = vst.msk [vmem:[%s1395_s5 + $0x10] sm:$0xf] %vm304_vm2, %v446_v22 }
 0x18b   :  { %390 = vxpose.xlu0.b32.cont [6/16] (narrow) %v812_v23, 32 }
 0x18c   :  { %v462_v25 = vpop.permute.xlu1 %461 }
 0x18d   :  { %497 = vst.msk [vmem:[%s1395_s5 + $0x30] sm:$0xf] %vm304_vm2, %v462_v25 }
 0x190   :  { %v448_v26 = vpop.permute.xlu1 %447 }
 0x191   :  { %490 = vst.msk [vmem:[%s1395_s5 + $0x14] sm:$0xf] %vm304_vm2, %v448_v26 }
 0x194   :  { %v464_v27 = vpop.permute.xlu1 %463 }
 0x195   :  { %498 = vst.msk [vmem:[%s1395_s5 + $0x34] sm:$0xf] %vm304_vm2, %v464_v27 }
 0x198   :  { %v820_v28 = vpop.permute.xlu1 %819 }
 0x199   :  { %v821_v29 = vunpack.i.l.bf16 %v820_v28  ;;  %v822_v31 = vunpack.i.h.bf16 %v820_v28 }
 0x19b   :  { %391 = vxpose.xlu0.b32.cont [7/16] (narrow) %v821_v29, 32 }
 0x19c   :  { %v510_v30 = vpop.permute.xlu1 %509 }
 0x19d   :  { %554 = vst.msk [vmem:[%s1397_s7 + $0x20] sm:$0xff] %vm549_vm3, %v510_v30 }
 0x19f   :  { %392 = vxpose.xlu0.b32.cont [8/16] (narrow) %v822_v31, 32 }
 0x1a0   :  { %v512_v33 = vpop.permute.xlu1 %511 }
 0x1a1   :  { %555 = vst.msk [vmem:[%s1397_s7 + $0x28] sm:$0xff] %vm549_vm3, %v512_v33 }
 0x1a3   :  { %393 = vxpose.xlu0.b32.cont [9/16] (narrow) %v796_v34, 32 }
 0x1a4   :  { %v514_v35 = vpop.permute.xlu1 %513 }
 0x1a5   :  { %556 = vst.msk [vmem:[%s1397_s7 + $0x30] sm:$0xff] %vm549_vm3, %v514_v35 }
 0x1a7   :  { %394 = vxpose.xlu0.b32.cont [10/16] (narrow) %v797_v36, 32 }
 0x1a8   :  { %v825_v37 = vpop.permute.xlu1 %824 }
 0x1a9   :  { %v826_v46 = vunpack.i.l.bf16 %v825_v37  ;;  %v827_v49 = vunpack.i.h.bf16 %v825_v37 }
 0x1ab   :  { %395 = vxpose.xlu0.b32.cont [11/16] (narrow) %v806_v38, 32 }
 0x1ac   :  { %v518_v39 = vpop.permute.xlu1 %517 }
 0x1ad   :  { %558 = vst.msk [vmem:[%s1397_s7 + $0x40] sm:$0xff] %vm549_vm3, %v518_v39 }
 0x1af   :  { %396 = vxpose.xlu0.b32.cont [12/16] (narrow) %v807_v40, 32 }
 0x1b0   :  { %v520_v41 = vpop.permute.xlu1 %519 }
 0x1b1   :  { %559 = vst.msk [vmem:[%s1397_s7 + $0x48] sm:$0xff] %vm549_vm3, %v520_v41 }
 0x1b3   :  { %397 = vxpose.xlu0.b32.cont [13/16] (narrow) %v816_v42, 32 }
 0x1b4   :  { %v522_v43 = vpop.permute.xlu1 %521 }
 0x1b5   :  { %560 = vst.msk [vmem:[%s1397_s7 + $0x50] sm:$0xff] %vm549_vm3, %v522_v43 }
 0x1b7   :  { %398 = vxpose.xlu0.b32.cont [14/16] (narrow) %v817_v44, 32 }
 0x1b8   :  { %v524_v45 = vpop.permute.xlu1 %523 }
 0x1b9   :  { %561 = vst.msk [vmem:[%s1397_s7 + $0x58] sm:$0xff] %vm549_vm3, %v524_v45 }
 0x1bb   :  { %399 = vxpose.xlu0.b32.cont [15/16] (narrow) %v826_v46, 32 }
 0x1bc   :  { %v526_v47 = vpop.permute.xlu1 %525 }
 0x1bd   :  { %562 = vst.msk [vmem:[%s1397_s7 + $0x60] sm:$0xff] %vm549_vm3, %v526_v47 }
 0x1bf   :  { %400 = vxpose.xlu0.b32.end [16/16] (narrow) %v827_v49, 32 }
 0x1c0   :  { %v528_v51 = vpop.permute.xlu1 %527 }
 0x1c1   :  { %563 = vst.msk [vmem:[%s1397_s7 + $0x68] sm:$0xff] %vm549_vm3, %v528_v51 }
 0x1c4   :  { %v530_v52 = vpop.permute.xlu1 %529 }
 0x1c5   :  { %564 = vst.msk [vmem:[%s1397_s7 + $0x70] sm:$0xff] %vm549_vm3, %v530_v52 }
 0x1c8   :  { %v450_v53 = vpop.permute.xlu1 %449 }
 0x1c9   :  { %491 = vst.msk [vmem:[%s1395_s5 + $0x18] sm:$0xf] %vm304_vm2, %v450_v53 }
 0x1cc   :  { %v466_v54 = vpop.permute.xlu1 %465 }
 0x1cd   :  { %499 = vst.msk [vmem:[%s1395_s5 + $0x38] sm:$0xf] %vm304_vm2, %v466_v54 }
 0x1d0   :  { %v452_v55 = vpop.permute.xlu1 %451 }
 0x1d1   :  { %492 = vst.msk [vmem:[%s1395_s5 + $0x1c] sm:$0xf] %vm304_vm2, %v452_v55 }
 0x1d4   :  { %v468_v58 = vpop.permute.xlu1 %467 }
 0x1d5   :  { %500 = vst.msk [vmem:[%s1395_s5 + $0x3c] sm:$0xf] %vm304_vm2, %v468_v58 }
 0x1d8   :  { %v532_v59 = vpop.permute.xlu1 %531 }
 0x1d9   :  { %565 = vst.msk [vmem:[%s1397_s7 + $0x78] sm:$0xff] %vm549_vm3, %v532_v59 }
 0x203   :  { %v401_v61 = vpop.trf.xlu0 }
 0x207   :  { %v402_v62 = vpop.trf.xlu0 }
 0x208   :  { %v772_v48 = vpack.c.bf16 %v402_v62, %v401_v61 }
 0x20a   :  { %773 = vst [vmem:[#allocation2] sm:$0xff] %v772_v48  }
 0x20b   :  { %v403_v18 = vpop.trf.xlu0 }
 0x20f   :  { %v404_v19 = vpop.trf.xlu0 }
 0x210   :  { %v777_v63 = vpack.c.bf16 %v404_v19, %v403_v18 }
 0x212   :  { %779 = vst [vmem:[#allocation2 + $0x8] sm:$0xff] %v777_v63  }
 0x213   :  { %849 = shalt.err (!%p846_p4)
}
 0x214   :  { %s850_s24 = scalar_lea.hbm %s1394_s4, 256 }
 0x215   :  { %p851_p5 = scmp.ne.s32.totalorder %s1394_s4, %s850_s24  ;;  %p854_p6 = scmp.lt.u32.totalorder %s850_s24, %s1394_s4 }
 0x217   :  { %p856_p7 = pnand %p854_p6, %p851_p5 }
 0x219   :  { %859 = shalt.err (!%p856_p7)
}
 0x21a   :  { %s867_s0 = smov 4  }
 0x21b   :  { %659 = dma.vmem_to_hbm [thread:$0]  %s654_s22, 256, %s1394_s4, [#allocation3], %s865_s28, %s865_s28, %s867_s0  }
 0x21c   :  { %860 = dma.done.wait [#allocation3], 256  }
 0x21d   :  { %861 = vsyncadd [#allocation3], 4294967040 }
 0x21e   :  { %677 = vsyncpa [#allocation3], 1 }

</bundles_post_ra>
